<compile_context>
chip_gen: v7x
topology: tpu7x:2x2x1
jax: 0.10.0
libtpu: 0.0.40
codegen_flags: <defaults>
</compile_context>

<pallas_src>
import jax
import jax.numpy as jnp
from jax.experimental import pallas as pl
from jax.experimental.pallas import tpu as pltpu

# (in_features, out_features) for fc1..fc8.
LAYER_DIMS = [(150, 150), (150, 150), (150, 100), (100, 100),
              (100, 50), (50, 25), (25, 10), (10, 1)]
NUM_LAYERS = len(LAYER_DIMS)
PAD = 256  # slab width: multiple of 128 that holds the widest layer (150)


def _round_up(x, m):
    return (x + m - 1) // m * m


# Padded K / N actually touched per layer inside the kernel (multiples of 128).
K_PAD = [_round_up(k, 128) for k, _ in LAYER_DIMS]   # [256,256,256,128,128,128,128,128]
N_PAD = [_round_up(n, 128) for _, n in LAYER_DIMS]   # [256,256,128,128,128,128,128,128]
# Activation width flows consistently through the padded layers.
assert K_PAD[0] == PAD and all(N_PAD[i - 1] == K_PAD[i] for i in range(1, NUM_LAYERS))


def mlp_kernel(x_ref, w_ref, b_ref, out_ref):
    """Fused 8x (matmul + bias + ReLU) on one (TILE_B, 256) batch tile.

    x_ref  : (TILE_B, 256) bf16   activations, features zero-padded 150 -> 256
    w_ref  : (8, 256, 256) bf16   weight slab, layer i valid in [:in_i, :out_i]
    b_ref  : (8, 256)      f32    bias slab
    out_ref: (TILE_B, 1)   f32
    """
    h = x_ref[...]                                  # bf16
    for i in range(NUM_LAYERS):
        k, n = K_PAD[i], N_PAD[i]
        w = w_ref[i, :k, :n]                        # static slice of resident slab
        b = b_ref[i:i + 1, :n]                      # (1, n) f32
        y = jnp.dot(h[:, :k], w,                    # bf16 x bf16 on MXU,
                    preferred_element_type=jnp.float32)  # f32 accumulation
        r = jnp.maximum(y + b, 0.0)                 # bias + ReLU in f32
        # Cast back to bf16 for the next layer's MXU pass; keep f32 at the end.
        h = r.astype(jnp.bfloat16) if i + 1 < NUM_LAYERS else r
    out_ref[...] = h[:, :1].astype(out_ref.dtype)   # masked (TILE_B, 1) store


def one_output_mlp(x, w_packed, b_packed, *, tile_b=512):
    """x: (B, 150) f32. w_packed: (8,256,256) bf16. b_packed: (8,256) f32."""
    B, f_in = x.shape
    assert f_in == LAYER_DIMS[0][0], f_in

    # Keep the batch tile a multiple of 16 (bf16 sublane packing) and no larger
    # than the (padded) batch.
    tile_b = max(16, min(tile_b, _round_up(B, 16)))
    b_pad = _round_up(B, tile_b)

    # Zero-pad batch -> tile multiple and features -> 256-wide slab, in bf16
    # (halves the x DMA traffic; zero padding is exact through matmul+ReLU).
    x_pad = jnp.zeros((b_pad, PAD), dtype=jnp.bfloat16)
    x_pad = x_pad.at[:B, :f_in].set(x.astype(jnp.bfloat16))

    out = pl.pallas_call(
        mlp_kernel,
        out_shape=jax.ShapeDtypeStruct((b_pad, 1), jnp.float32),
        grid_spec=pltpu.PrefetchScalarGridSpec(
            num_scalar_prefetch=0,
            grid=(b_pad // tile_b,),
            in_specs=[
                # batch-tiled activations (double-buffered across grid steps)
                pl.BlockSpec((tile_b, PAD), lambda i: (i, 0)),
                # weight / bias slabs: constant block index -> VMEM-resident
                pl.BlockSpec((NUM_LAYERS, PAD, PAD), lambda i: (0, 0, 0)),
                pl.BlockSpec((NUM_LAYERS, PAD), lambda i: (0, 0)),
            ],
            out_specs=pl.BlockSpec((tile_b, 1), lambda i: (i, 0)),
        ),
        compiler_params=pltpu.CompilerParams(
            # Batch tiles are independent -> megacore sharding on v7x (2 TCs).
            dimension_semantics=("parallel",),
        ),
    )(x_pad, w_packed, b_packed)
    return out[:B]


def init_params(seed=7):
    """Deterministic xavier_normal weights (stored as (in, out)) and zero biases."""
    key = jax.random.PRNGKey(seed)
    weights, biases = [], []
    for fan_in, fan_out in LAYER_DIMS:
        key, sub = jax.random.split(key)
        std = (2.0 / (fan_in + fan_out)) ** 0.5
        weights.append(std * jax.random.normal(sub, (fan_in, fan_out), jnp.float32))
        biases.append(jnp.zeros((fan_out,), jnp.float32))
    return weights, biases


def pack_params(weights, biases):
    """Pack per-layer params into two zero-padded slabs.

    NOTE: torch checkpoints store nn.Linear weight as (out, in); transpose to
    (in, out) before calling this, or results will be wrong.
    """
    w_packed = jnp.zeros((NUM_LAYERS, PAD, PAD), dtype=jnp.bfloat16)
    b_packed = jnp.zeros((NUM_LAYERS, PAD), dtype=jnp.float32)
    for i, ((fan_in, fan_out), w, b) in enumerate(zip(LAYER_DIMS, weights, biases)):
        w_packed = w_packed.at[i, :fan_in, :fan_out].set(w.astype(jnp.bfloat16))
        b_packed = b_packed.at[i, :fan_out].set(b.astype(jnp.float32))
    return w_packed, b_packed


def reference_forward(x, weights, biases):
    """Plain-JAX reference with the same bf16-weight / f32-accumulate semantics."""
    h = x.astype(jnp.bfloat16)
    for i, (w, b) in enumerate(zip(weights, biases)):
        y = jnp.dot(h, w.astype(jnp.bfloat16),
                    preferred_element_type=jnp.float32) + b
        r = jnp.maximum(y, 0.0)
        h = r.astype(jnp.bfloat16) if i + 1 < len(weights) else r
    return h


if __name__ == "__main__":
    B = 64  # small demo batch
    x = jax.random.normal(jax.random.PRNGKey(0), (B, LAYER_DIMS[0][0]), jnp.float32)

    weights, biases = init_params(seed=7)
    w_packed, b_packed = pack_params(weights, biases)

    out = jax.block_until_ready(one_output_mlp(x, w_packed, b_packed, tile_b=512))
    ref = reference_forward(x, weights, biases)

    assert out.shape == (B, 1), out.shape
    assert jnp.allclose(out, ref, atol=1e-3, rtol=1e-3), (out, ref)
    print("KERNEL_OK")
</pallas_src>

<mosaic_0001>
module attributes {stable_mosaic.version = 11 : i64} {
  func.func @mlp_kernel(%arg0: i32, %arg1: memref<64x256xbf16, #tpu.memory_space<vmem>>, %arg2: memref<8x256x256xbf16, #tpu.memory_space<vmem>>, %arg3: memref<8x256xf32, #tpu.memory_space<vmem>>, %arg4: memref<64x1xf32, #tpu.memory_space<vmem>>) attributes {dimension_semantics = [#tpu.dimension_semantics<parallel>], iteration_bounds = array<i64: 1>, scalar_prefetch = 0 : i64, scratch_operands = 0 : i64, tpu.core_type = #tpu.core_type<tc>, window_params = [{transform_indices = @transform_0, window_bounds = array<i64: 64, 256>}, {pipeline_mode = #tpu.pipeline_mode<synchronous>, transform_indices = @transform_1, window_bounds = array<i64: 8, 256, 256>}, {pipeline_mode = #tpu.pipeline_mode<synchronous>, transform_indices = @transform_2, window_bounds = array<i64: 8, 256>}, {transform_indices = @transform_3, window_bounds = array<i64: 64, 1>}]} {
    %c0 = arith.constant 0 : index
    %c0_0 = arith.constant 0 : index
    %0 = vector.load %arg1[%c0, %c0_0] : memref<64x256xbf16, #tpu.memory_space<vmem>>, vector<64x256xbf16>
    %c0_1 = arith.constant 0 : index
    %c0_2 = arith.constant 0 : index
    %c0_3 = arith.constant 0 : index
    %1 = vector.load %arg2[%c0_1, %c0_2, %c0_3] : memref<8x256x256xbf16, #tpu.memory_space<vmem>>, vector<1x256x256xbf16>
    %2 = vector.shape_cast %1 : vector<1x256x256xbf16> to vector<256x256xbf16>
    %c0_4 = arith.constant 0 : index
    %c0_5 = arith.constant 0 : index
    %3 = vector.load %arg3[%c0_4, %c0_5] : memref<8x256xf32, #tpu.memory_space<vmem>>, vector<1x256xf32>
    %cst = arith.constant dense<0.000000e+00> : vector<64x256xf32>
    %4 = tpu.matmul %0, %2, %cst {dimension_numbers = #tpu.dot_dimension_numbers<[1], [0], [0], [1], [0, 0, 1, 1], [], []>} : vector<64x256xbf16>, vector<256x256xbf16>, vector<64x256xf32> -> vector<64x256xf32>
    %5 = vector.broadcast %3 : vector<1x256xf32> to vector<64x256xf32>
    %6 = arith.addf %4, %5 : vector<64x256xf32>
    %cst_6 = arith.constant 0.000000e+00 : f32
    %7 = vector.broadcast %cst_6 : f32 to vector<64x256xf32>
    %8 = arith.maximumf %6, %7 : vector<64x256xf32>
    %9 = arith.truncf %8 : vector<64x256xf32> to vector<64x256xbf16>
    %c1 = arith.constant 1 : index
    %c0_7 = arith.constant 0 : index
    %c0_8 = arith.constant 0 : index
    %10 = vector.load %arg2[%c1, %c0_7, %c0_8] : memref<8x256x256xbf16, #tpu.memory_space<vmem>>, vector<1x256x256xbf16>
    %11 = vector.shape_cast %10 : vector<1x256x256xbf16> to vector<256x256xbf16>
    %c1_9 = arith.constant 1 : index
    %c0_10 = arith.constant 0 : index
    %12 = vector.load %arg3[%c1_9, %c0_10] : memref<8x256xf32, #tpu.memory_space<vmem>>, vector<1x256xf32>
    %cst_11 = arith.constant dense<0.000000e+00> : vector<64x256xf32>
    %13 = tpu.matmul %9, %11, %cst_11 {dimension_numbers = #tpu.dot_dimension_numbers<[1], [0], [0], [1], [0, 0, 1, 1], [], []>} : vector<64x256xbf16>, vector<256x256xbf16>, vector<64x256xf32> -> vector<64x256xf32>
    %14 = vector.broadcast %12 : vector<1x256xf32> to vector<64x256xf32>
    %15 = arith.addf %13, %14 : vector<64x256xf32>
    %cst_12 = arith.constant 0.000000e+00 : f32
    %16 = vector.broadcast %cst_12 : f32 to vector<64x256xf32>
    %17 = arith.maximumf %15, %16 : vector<64x256xf32>
    %18 = arith.truncf %17 : vector<64x256xf32> to vector<64x256xbf16>
    %c2 = arith.constant 2 : index
    %c0_13 = arith.constant 0 : index
    %c0_14 = arith.constant 0 : index
    %19 = vector.load %arg2[%c2, %c0_13, %c0_14] : memref<8x256x256xbf16, #tpu.memory_space<vmem>>, vector<1x256x128xbf16>
    %20 = vector.shape_cast %19 : vector<1x256x128xbf16> to vector<256x128xbf16>
    %c2_15 = arith.constant 2 : index
    %c0_16 = arith.constant 0 : index
    %21 = vector.load %arg3[%c2_15, %c0_16] : memref<8x256xf32, #tpu.memory_space<vmem>>, vector<1x128xf32>
    %cst_17 = arith.constant dense<0.000000e+00> : vector<64x128xf32>
    %22 = tpu.matmul %18, %20, %cst_17 {dimension_numbers = #tpu.dot_dimension_numbers<[1], [0], [0], [1], [0, 0, 1, 1], [], []>} : vector<64x256xbf16>, vector<256x128xbf16>, vector<64x128xf32> -> vector<64x128xf32>
    %23 = vector.broadcast %21 : vector<1x128xf32> to vector<64x128xf32>
    %24 = arith.addf %22, %23 : vector<64x128xf32>
    %cst_18 = arith.constant 0.000000e+00 : f32
    %25 = vector.broadcast %cst_18 : f32 to vector<64x128xf32>
    %26 = arith.maximumf %24, %25 : vector<64x128xf32>
    %27 = arith.truncf %26 : vector<64x128xf32> to vector<64x128xbf16>
    %c3 = arith.constant 3 : index
    %c0_19 = arith.constant 0 : index
    %c0_20 = arith.constant 0 : index
    %28 = vector.load %arg2[%c3, %c0_19, %c0_20] : memref<8x256x256xbf16, #tpu.memory_space<vmem>>, vector<1x128x128xbf16>
    %29 = vector.shape_cast %28 : vector<1x128x128xbf16> to vector<128x128xbf16>
    %c3_21 = arith.constant 3 : index
    %c0_22 = arith.constant 0 : index
    %30 = vector.load %arg3[%c3_21, %c0_22] : memref<8x256xf32, #tpu.memory_space<vmem>>, vector<1x128xf32>
    %cst_23 = arith.constant dense<0.000000e+00> : vector<64x128xf32>
    %31 = tpu.matmul %27, %29, %cst_23 {dimension_numbers = #tpu.dot_dimension_numbers<[1], [0], [0], [1], [0, 0, 1, 1], [], []>} : vector<64x128xbf16>, vector<128x128xbf16>, vector<64x128xf32> -> vector<64x128xf32>
    %32 = vector.broadcast %30 : vector<1x128xf32> to vector<64x128xf32>
    %33 = arith.addf %31, %32 : vector<64x128xf32>
    %cst_24 = arith.constant 0.000000e+00 : f32
    %34 = vector.broadcast %cst_24 : f32 to vector<64x128xf32>
    %35 = arith.maximumf %33, %34 : vector<64x128xf32>
    %36 = arith.truncf %35 : vector<64x128xf32> to vector<64x128xbf16>
    %c4 = arith.constant 4 : index
    %c0_25 = arith.constant 0 : index
    %c0_26 = arith.constant 0 : index
    %37 = vector.load %arg2[%c4, %c0_25, %c0_26] : memref<8x256x256xbf16, #tpu.memory_space<vmem>>, vector<1x128x128xbf16>
    %38 = vector.shape_cast %37 : vector<1x128x128xbf16> to vector<128x128xbf16>
    %c4_27 = arith.constant 4 : index
    %c0_28 = arith.constant 0 : index
    %39 = vector.load %arg3[%c4_27, %c0_28] : memref<8x256xf32, #tpu.memory_space<vmem>>, vector<1x128xf32>
    %cst_29 = arith.constant dense<0.000000e+00> : vector<64x128xf32>
    %40 = tpu.matmul %36, %38, %cst_29 {dimension_numbers = #tpu.dot_dimension_numbers<[1], [0], [0], [1], [0, 0, 1, 1], [], []>} : vector<64x128xbf16>, vector<128x128xbf16>, vector<64x128xf32> -> vector<64x128xf32>
    %41 = vector.broadcast %39 : vector<1x128xf32> to vector<64x128xf32>
    %42 = arith.addf %40, %41 : vector<64x128xf32>
    %cst_30 = arith.constant 0.000000e+00 : f32
    %43 = vector.broadcast %cst_30 : f32 to vector<64x128xf32>
    %44 = arith.maximumf %42, %43 : vector<64x128xf32>
    %45 = arith.truncf %44 : vector<64x128xf32> to vector<64x128xbf16>
    %c5 = arith.constant 5 : index
    %c0_31 = arith.constant 0 : index
    %c0_32 = arith.constant 0 : index
    %46 = vector.load %arg2[%c5, %c0_31, %c0_32] : memref<8x256x256xbf16, #tpu.memory_space<vmem>>, vector<1x128x128xbf16>
    %47 = vector.shape_cast %46 : vector<1x128x128xbf16> to vector<128x128xbf16>
    %c5_33 = arith.constant 5 : index
    %c0_34 = arith.constant 0 : index
    %48 = vector.load %arg3[%c5_33, %c0_34] : memref<8x256xf32, #tpu.memory_space<vmem>>, vector<1x128xf32>
    %cst_35 = arith.constant dense<0.000000e+00> : vector<64x128xf32>
    %49 = tpu.matmul %45, %47, %cst_35 {dimension_numbers = #tpu.dot_dimension_numbers<[1], [0], [0], [1], [0, 0, 1, 1], [], []>} : vector<64x128xbf16>, vector<128x128xbf16>, vector<64x128xf32> -> vector<64x128xf32>
    %50 = vector.broadcast %48 : vector<1x128xf32> to vector<64x128xf32>
    %51 = arith.addf %49, %50 : vector<64x128xf32>
    %cst_36 = arith.constant 0.000000e+00 : f32
    %52 = vector.broadcast %cst_36 : f32 to vector<64x128xf32>
    %53 = arith.maximumf %51, %52 : vector<64x128xf32>
    %54 = arith.truncf %53 : vector<64x128xf32> to vector<64x128xbf16>
    %c6 = arith.constant 6 : index
    %c0_37 = arith.constant 0 : index
    %c0_38 = arith.constant 0 : index
    %55 = vector.load %arg2[%c6, %c0_37, %c0_38] : memref<8x256x256xbf16, #tpu.memory_space<vmem>>, vector<1x128x128xbf16>
    %56 = vector.shape_cast %55 : vector<1x128x128xbf16> to vector<128x128xbf16>
    %c6_39 = arith.constant 6 : index
    %c0_40 = arith.constant 0 : index
    %57 = vector.load %arg3[%c6_39, %c0_40] : memref<8x256xf32, #tpu.memory_space<vmem>>, vector<1x128xf32>
    %cst_41 = arith.constant dense<0.000000e+00> : vector<64x128xf32>
    %58 = tpu.matmul %54, %56, %cst_41 {dimension_numbers = #tpu.dot_dimension_numbers<[1], [0], [0], [1], [0, 0, 1, 1], [], []>} : vector<64x128xbf16>, vector<128x128xbf16>, vector<64x128xf32> -> vector<64x128xf32>
    %59 = vector.broadcast %57 : vector<1x128xf32> to vector<64x128xf32>
    %60 = arith.addf %58, %59 : vector<64x128xf32>
    %cst_42 = arith.constant 0.000000e+00 : f32
    %61 = vector.broadcast %cst_42 : f32 to vector<64x128xf32>
    %62 = arith.maximumf %60, %61 : vector<64x128xf32>
    %63 = arith.truncf %62 : vector<64x128xf32> to vector<64x128xbf16>
    %c7 = arith.constant 7 : index
    %c0_43 = arith.constant 0 : index
    %c0_44 = arith.constant 0 : index
    %64 = vector.load %arg2[%c7, %c0_43, %c0_44] : memref<8x256x256xbf16, #tpu.memory_space<vmem>>, vector<1x128x128xbf16>
    %65 = vector.shape_cast %64 : vector<1x128x128xbf16> to vector<128x128xbf16>
    %c7_45 = arith.constant 7 : index
    %c0_46 = arith.constant 0 : index
    %66 = vector.load %arg3[%c7_45, %c0_46] : memref<8x256xf32, #tpu.memory_space<vmem>>, vector<1x128xf32>
    %cst_47 = arith.constant dense<0.000000e+00> : vector<64x128xf32>
    %67 = tpu.matmul %63, %65, %cst_47 {dimension_numbers = #tpu.dot_dimension_numbers<[1], [0], [0], [1], [0, 0, 1, 1], [], []>} : vector<64x128xbf16>, vector<128x128xbf16>, vector<64x128xf32> -> vector<64x128xf32>
    %68 = vector.broadcast %66 : vector<1x128xf32> to vector<64x128xf32>
    %69 = arith.addf %67, %68 : vector<64x128xf32>
    %cst_48 = arith.constant 0.000000e+00 : f32
    %70 = vector.broadcast %cst_48 : f32 to vector<64x128xf32>
    %71 = arith.maximumf %69, %70 : vector<64x128xf32>
    %72 = vector.extract_strided_slice %71 {offsets = [0, 0], sizes = [64, 1], strides = [1, 1]} : vector<64x128xf32> to vector<64x1xf32>
    %c0_49 = arith.constant 0 : index
    %c0_50 = arith.constant 0 : index
    %73 = vector.load %arg4[%c0_49, %c0_50] : memref<64x1xf32, #tpu.memory_space<vmem>>, vector<64x1xf32>
    tpu.vector_store %arg4[%c0_49, %c0_50], %72 {strides = array<i32>} : memref<64x1xf32, #tpu.memory_space<vmem>>, vector<64x1xf32>,
    return
  }
  func.func @transform_0(%arg0: i32) -> (i32, i32) {
    %c0_i32 = arith.constant 0 : i32
    %c0_i32_0 = arith.constant 0 : i32
    return %arg0, %c0_i32 : i32, i32
  }
  func.func @transform_1(%arg0: i32) -> (i32, i32, i32) {
    %c0_i32 = arith.constant 0 : i32
    %c0_i32_0 = arith.constant 0 : i32
    %c0_i32_1 = arith.constant 0 : i32
    %c0_i32_2 = arith.constant 0 : i32
    return %c0_i32, %c0_i32_0, %c0_i32_1 : i32, i32, i32
  }
  func.func @transform_2(%arg0: i32) -> (i32, i32) {
    %c0_i32 = arith.constant 0 : i32
    %c0_i32_0 = arith.constant 0 : i32
    %c0_i32_1 = arith.constant 0 : i32
    return %c0_i32, %c0_i32_0 : i32, i32
  }
  func.func @transform_3(%arg0: i32) -> (i32, i32) {
    %c0_i32 = arith.constant 0 : i32
    %c0_i32_0 = arith.constant 0 : i32
    return %arg0, %c0_i32 : i32, i32
  }
}

</mosaic_0001>

<bundles_post_ra>
// kernel: tpu_custom_call.1
= control target key start
LH: loop header
LB: loop body
LE: loop exit
PB: predicated region body
PF: predicated region fallthrough
CT: control target
= control target key end

     0   :  { %8 = vsyncpa [#allocation3], 0  ;;  %s2338_s0 = inlined_call_operand.hbm [shape: bf16[64,256], index: 0, kind: input, shape index: {}]   ;;  %s2339_s1 = inlined_call_operand.hbm [shape: bf16[8,256,256], index: 1, kind: input, shape index: {}]   ;;  %s2340_s2 = inlined_call_operand.hbm [shape: f32[8,256], index: 2, kind: input, shape index: {}]   ;;  %s2341_s3 = inlined_call_operand.vmem [shape: f32[64,1], index: 3, kind: output, shape index: {}]  }
   0x1   :  { %9 = vsyncpa [#allocation5], 0  ;;  %s2226_s12 = smov [#allocation4]   ;;  %s2227_s14 = smov [#allocation2]  }
   0x2   :  { %s27_s13 = sshll.u32 %s2226_s12, 4  ;;  %s15_s15 = sshll.u32 %s2227_s14, 4  ;;  %s28_s13 = int_to_ptr.vmem [resolvable:$true] %s27_s13  ;;  %s2251_s15 = int_to_ptr.vmem [resolvable:$true] %s15_s15 }
   0x3   :  { %s2156_s18 = scalar_lea.hbm %s2339_s1, 32768 }
   0x4   :  { %p2157_p0 = scmp.ne.s32.totalorder %s2339_s1, %s2156_s18  ;;  %p2160_p1 = scmp.lt.u32.totalorder %s2156_s18, %s2339_s1 }
   0x6   :  { %p2162_p2 = pnand %p2160_p1, %p2157_p0 }
   0x8   :  { %2165 = shalt.err (!%p2162_p2)
}
   0x9   :  { %s2166_s23 = scalar_lea.vmem %s28_s13, 32768  ;;  %p2171_p4 = scmp.lt.s32.totalorder %s28_s13, %s28_s13 }
   0xa   :  { %p2167_p3 = scmp.ne.s32.totalorder %s28_s13, %s2166_s23  ;;  %p2172_p5 = scmp.lt.s32.totalorder %s2166_s23, %s2166_s23 }
   0xc   :  { %p2173_p6 = por %p2172_p5, %p2171_p4 }
   0xe   :  { %p2174_p7 = pnand %p2173_p6, %p2167_p3 }
  0x10   :  { %2177 = shalt.err (!%p2174_p7)
}
  0x11   :  { %s2228_s24 = smov 128   ;;  %s2229_s25 = smov 8  }
  0x12   :  { %33 = dma.hbm_to_vmem [thread:$0]  %s2339_s1, 32768, %s28_s13, [#allocation5], %s2228_s24, %s2228_s24, %s2229_s25  }
  0x13   :  { %s2178_s30 = scalar_lea.hbm %s2338_s0, 1024 }
  0x14   :  { %p2179_p8 = scmp.ne.s32.totalorder %s2338_s0, %s2178_s30  ;;  %p2182_p9 = scmp.lt.u32.totalorder %s2178_s30, %s2338_s0 }
  0x16   :  { %p2184_p10 = pnand %p2182_p9, %p2179_p8 }
  0x18   :  { %2187 = shalt.err (!%p2184_p10)
}
  0x19   :  { %s2188_s8 = scalar_lea.vmem %s2251_s15, 1024  ;;  %p2193_p12 = scmp.lt.s32.totalorder %s2251_s15, %s2251_s15 }
  0x1a   :  { %p2189_p11 = scmp.ne.s32.totalorder %s2251_s15, %s2188_s8  ;;  %p2194_p13 = scmp.lt.s32.totalorder %s2188_s8, %s2188_s8 }
  0x1c   :  { %p2195_p0 = por %p2194_p13, %p2193_p12 }
  0x1e   :  { %p2196_p1 = pnand %p2195_p0, %p2189_p11 }
  0x20   :  { %2199 = shalt.err (!%p2196_p1)
}
  0x21   :  { %21 = dma.hbm_to_vmem [thread:$0]  %s2338_s0, 1024, %s2251_s15, [#allocation3], %s2228_s24, %s2228_s24, %s2229_s25  }
  0x22   :  { %s2230_s10 = smov [#allocation6]   ;;  %s2200_s14 = scalar_lea.hbm %s2340_s2, 256 }
  0x23   :  { %s40_s11 = sshll.u32 %s2230_s10, 4  ;;  %p2201_p2 = scmp.ne.s32.totalorder %s2340_s2, %s2200_s14  ;;  %s41_s11 = int_to_ptr.vmem [resolvable:$true] %s40_s11 }
  0x24   :  { %p2204_p3 = scmp.lt.u32.totalorder %s2200_s14, %s2340_s2 }
  0x26   :  { %p2206_p4 = pnand %p2204_p3, %p2201_p2 }
  0x28   :  { %2209 = shalt.err (!%p2206_p4)
}
  0x29   :  { %s2210_s20 = scalar_lea.vmem %s41_s11, 256  ;;  %p2215_p6 = scmp.lt.s32.totalorder %s41_s11, %s41_s11 }
  0x2a   :  { %p2211_p5 = scmp.ne.s32.totalorder %s41_s11, %s2210_s20  ;;  %p2216_p7 = scmp.lt.s32.totalorder %s2210_s20, %s2210_s20 }
  0x2c   :  { %p2217_p8 = por %p2216_p7, %p2215_p6 }
  0x2e   :  { %p2218_p9 = pnand %p2217_p8, %p2211_p5 }
  0x30   :  { %2221 = shalt.err (!%p2218_p9)
}
  0x31   :  { %43 = dma.hbm_to_vmem [thread:$0]  %s2340_s2, 256, %s41_s11, [#allocation5]  }
  0x32   :  { %2222 = dma.done.wait [#allocation3], 1024  }
  0x33   :  { %2223 = vsyncadd [#allocation3], 4294966272 }
  0x34   :  { %2224 = dma.done.wait [#allocation5], 33024  }
  0x35   :  { %2225 = vsyncadd [#allocation5], 4294934272  ;;  %v1992_v0 = vld [vmem:[#allocation4 + $0x4] ss:$8 sps:$4 sm:$0xff]   ;;  %v1994_v1 = vld [vmem:[#allocation4] ss:$8 sps:$4 sm:$0xff]  }
  0x36   :  { %306 = vmatprep.subr.bf16.mxu0 %v1992_v0  ;;  %v1995_v2 = vld [vmem:[#allocation4 + $0x14] ss:$8 sps:$4 sm:$0xff]   ;;  %v1997_v3 = vld [vmem:[#allocation4 + $0x10] ss:$8 sps:$4 sm:$0xff]   ;;  %v1998_v4 = vld [vmem:[#allocation4 + $0x24] ss:$8 sps:$4 sm:$0xff]  }
  0x37   :  { %307 = vmatpush1.bf16.msra.mxu0 %v1994_v1  ;;  %v2000_v5 = vld [vmem:[#allocation4 + $0x20] ss:$8 sps:$4 sm:$0xff]   ;;  %v2001_v6 = vld [vmem:[#allocation4 + $0x34] ss:$8 sps:$4 sm:$0xff]   ;;  %v2003_v7 = vld [vmem:[#allocation4 + $0x30] ss:$8 sps:$4 sm:$0xff]  }
  0x38   :  { %308 = vmatprep.subr.bf16.mxu0 %v1995_v2  ;;  %v2004_v8 = vld [vmem:[#allocation4 + $0x44] ss:$8 sps:$4 sm:$0xff]   ;;  %v2006_v9 = vld [vmem:[#allocation4 + $0x40] ss:$8 sps:$4 sm:$0xff]   ;;  %v2007_v10 = vld [vmem:[#allocation4 + $0x54] ss:$8 sps:$4 sm:$0xff]  }
  0x39   :  { %v2009_v11 = vld [vmem:[#allocation4 + $0x50] ss:$8 sps:$4 sm:$0xff]   ;;  %v2010_v12 = vld [vmem:[#allocation4 + $0x64] ss:$8 sps:$4 sm:$0xff]   ;;  %v2012_v14 = vld [vmem:[#allocation4 + $0x60] ss:$8 sps:$4 sm:$0xff]  }
  0x3a   :  { %v2042_v13 = vld [vmem:[#allocation2 + $0x4] ss:$8 sps:$4 sm:$0xff]   ;;  %v2013_v15 = vld [vmem:[#allocation4 + $0x74] ss:$8 sps:$4 sm:$0xff]   ;;  %v2015_v16 = vld [vmem:[#allocation4 + $0x70] ss:$8 sps:$4 sm:$0xff]  }
  0x3b   :  { %309 = vmatpush1.bf16.msra.mxu0 %v1997_v3  ;;  %338 = vmatprep.mubr.bf16.mxu0 %v2042_v13  ;;  %v2016_v17 = vld [vmem:[#allocation4 + $0x84] ss:$8 sps:$4 sm:$0xff]   ;;  %v2054_v19 = vld [vmem:[#allocation4 + $0x100] ss:$8 sps:$4 sm:$0xff]   ;;  %v2055_v20 = vld [vmem:[#allocation4 + $0x114] ss:$8 sps:$4 sm:$0xff]  }
  0x3c   :  { %310 = vmatprep.subr.bf16.mxu0 %v1998_v4  ;;  %v2052_v18 = vld [vmem:[#allocation4 + $0x104] ss:$8 sps:$4 sm:$0xff]   ;;  %v2057_v21 = vld [vmem:[#allocation4 + $0x110] ss:$8 sps:$4 sm:$0xff]   ;;  %v2018_v22 = vld [vmem:[#allocation4 + $0x80] ss:$8 sps:$4 sm:$0xff]  }
  0x3d   :  { %609 = vmatprep.subr.bf16.mxu1 %v2052_v18  ;;  %v2058_v23 = vld [vmem:[#allocation4 + $0x124] ss:$8 sps:$4 sm:$0xff]   ;;  %v2019_v24 = vld [vmem:[#allocation4 + $0x94] ss:$8 sps:$4 sm:$0xff]   ;;  %v2060_v25 = vld [vmem:[#allocation4 + $0x120] ss:$8 sps:$4 sm:$0xff]  }
  0x3e   :  { %610 = vmatpush1.bf16.msra.mxu1 %v2054_v19  ;;  %v2021_v26 = vld [vmem:[#allocation4 + $0x90] ss:$8 sps:$4 sm:$0xff]   ;;  %v2061_v27 = vld [vmem:[#allocation4 + $0x134] ss:$8 sps:$4 sm:$0xff]   ;;  %v2022_v28 = vld [vmem:[#allocation4 + $0xa4] ss:$8 sps:$4 sm:$0xff]  }
  0x3f   :  { %311 = vmatpush1.bf16.msra.mxu0 %v2000_v5  ;;  %611 = vmatprep.subr.bf16.mxu1 %v2055_v20  ;;  %v2063_v29 = vld [vmem:[#allocation4 + $0x130] ss:$8 sps:$4 sm:$0xff]   ;;  %v2024_v30 = vld [vmem:[#allocation4 + $0xa0] ss:$8 sps:$4 sm:$0xff]   ;;  %v2064_v31 = vld [vmem:[#allocation4 + $0x144] ss:$8 sps:$4 sm:$0xff]   ;;  %v96_v20 = vlaneseq }
  0x40   :  { %312 = vmatprep.subr.bf16.mxu0 %v2001_v6  ;;  %v2025_v32 = vld [vmem:[#allocation4 + $0xb4] ss:$8 sps:$4 sm:$0xff]   ;;  %v2027_v33 = vld [vmem:[#allocation4 + $0xb0] ss:$8 sps:$4 sm:$0xff]   ;;  %v2066_v34 = vld [vmem:[#allocation4 + $0x140] ss:$8 sps:$4 sm:$0xff]  }
  0x41   :  { %v2028_v35 = vld [vmem:[#allocation4 + $0xc4] ss:$8 sps:$4 sm:$0xff]   ;;  %v2067_v36 = vld [vmem:[#allocation4 + $0x154] ss:$8 sps:$4 sm:$0xff]   ;;  %v2069_v37 = vld [vmem:[#allocation4 + $0x150] ss:$8 sps:$4 sm:$0xff]  }
  0x42   :  { %612 = vmatpush1.bf16.msra.mxu1 %v2057_v21  ;;  %v2030_v38 = vld [vmem:[#allocation4 + $0xc0] ss:$8 sps:$4 sm:$0xff]   ;;  %v2070_v39 = vld [vmem:[#allocation4 + $0x164] ss:$8 sps:$4 sm:$0xff]   ;;  %v2031_v40 = vld [vmem:[#allocation4 + $0xd4] ss:$8 sps:$4 sm:$0xff]  }
  0x43   :  { %313 = vmatpush1.bf16.msra.mxu0 %v2003_v7  ;;  %613 = vmatprep.subr.bf16.mxu1 %v2058_v23  ;;  %v2072_v41 = vld [vmem:[#allocation4 + $0x160] ss:$8 sps:$4 sm:$0xff]   ;;  %v2033_v42 = vld [vmem:[#allocation4 + $0xd0] ss:$8 sps:$4 sm:$0xff]   ;;  %v2073_v43 = vld [vmem:[#allocation4 + $0x174] ss:$8 sps:$4 sm:$0xff]  }
  0x44   :  { %314 = vmatprep.subr.bf16.mxu0 %v2004_v8  ;;  %v2034_v44 = vld [vmem:[#allocation4 + $0xe4] ss:$8 sps:$4 sm:$0xff]   ;;  %v2075_v45 = vld [vmem:[#allocation4 + $0x170] ss:$8 sps:$4 sm:$0xff]   ;;  %v2036_v46 = vld [vmem:[#allocation4 + $0xe0] ss:$8 sps:$4 sm:$0xff]  }
  0x45   :  { %v2076_v47 = vld [vmem:[#allocation4 + $0x184] ss:$8 sps:$4 sm:$0xff]   ;;  %v2037_v48 = vld [vmem:[#allocation4 + $0xf4] ss:$8 sps:$4 sm:$0xff]   ;;  %v2078_v49 = vld [vmem:[#allocation4 + $0x180] ss:$8 sps:$4 sm:$0xff]  }
  0x46   :  { %614 = vmatpush1.bf16.msra.mxu1 %v2060_v25  ;;  %v2039_v50 = vld [vmem:[#allocation4 + $0xf0] ss:$8 sps:$4 sm:$0xff]   ;;  %v2079_v51 = vld [vmem:[#allocation4 + $0x194] ss:$8 sps:$4 sm:$0xff]   ;;  %v2040_v52 = vld [vmem:[#allocation2] ss:$8 sps:$4 sm:$0xff]  }
  0x47   :  { %315 = vmatpush1.bf16.msra.mxu0 %v2006_v9  ;;  %615 = vmatprep.subr.bf16.mxu1 %v2061_v27  ;;  %v2081_v53 = vld [vmem:[#allocation4 + $0x190] ss:$8 sps:$4 sm:$0xff]   ;;  %v2043_v54 = vld [vmem:[#allocation2 + $0x14] ss:$8 sps:$4 sm:$0xff]   ;;  %v2082_v55 = vld [vmem:[#allocation4 + $0x1a4] ss:$8 sps:$4 sm:$0xff]  }
  0x48   :  { %316 = vmatprep.subr.bf16.mxu0 %v2007_v10  ;;  %v2084_v56 = vld [vmem:[#allocation4 + $0x1a0] ss:$8 sps:$4 sm:$0xff]   ;;  %v2085_v57 = vld [vmem:[#allocation4 + $0x1b4] ss:$8 sps:$4 sm:$0xff]   ;;  %v2045_v58 = vld [vmem:[#allocation2 + $0x10] ss:$8 sps:$4 sm:$0xff]  }
  0x49   :  { %v2087_v59 = vld [vmem:[#allocation4 + $0x1b0] ss:$8 sps:$4 sm:$0xff]   ;;  %v2046_v60 = vld [vmem:[#allocation2 + $0x24] ss:$8 sps:$4 sm:$0xff]   ;;  %v2090_v62 = vld [vmem:[#allocation4 + $0x1c0] ss:$8 sps:$4 sm:$0xff]  }
  0x4a   :  { %616 = vmatpush1.bf16.msra.mxu1 %v2063_v29  ;;  %v2088_v61 = vld [vmem:[#allocation4 + $0x1c4] ss:$8 sps:$4 sm:$0xff]   ;;  %v2091_v63 = vld [vmem:[#allocation4 + $0x1d4] ss:$8 sps:$4 sm:$0xff]   ;;  %v2048_v0 = vld [vmem:[#allocation2 + $0x20] ss:$8 sps:$4 sm:$0xff]  }
  0x4b   :  { %317 = vmatpush1.bf16.msra.mxu0 %v2009_v11  ;;  %617 = vmatprep.subr.bf16.mxu1 %v2064_v31  ;;  %v2049_v1 = vld [vmem:[#allocation2 + $0x34] ss:$8 sps:$4 sm:$0xff]   ;;  %v2051_v2 = vld [vmem:[#allocation2 + $0x30] ss:$8 sps:$4 sm:$0xff]   ;;  %v2094_v4 = vld [vmem:[#allocation4 + $0x1e4] ss:$8 sps:$4 sm:$0xff]  }
  0x4c   :  { %318 = vmatprep.subr.bf16.mxu0 %v2010_v12  ;;  %v2093_v3 = vld [vmem:[#allocation4 + $0x1d0] ss:$8 sps:$4 sm:$0xff]   ;;  %v2096_v5 = vld [vmem:[#allocation4 + $0x1e0] ss:$8 sps:$4 sm:$0xff]   ;;  %v2097_v6 = vld [vmem:[#allocation4 + $0x1f4] ss:$8 sps:$4 sm:$0xff]  }
  0x4d   :  { %v2099_v7 = vld [vmem:[#allocation4 + $0x1f0] ss:$8 sps:$4 sm:$0xff]   ;;  %v2100_v8 = vld [vmem:[#allocation4 + $0x280] ss:$8 sps:$4 sm:$0xff]   ;;  %v2294_v21 = vshrl.u32 %v96_v20, 7  ;;  %vm1624_vm0 = vcmask 7168  }
  0x4e   :  { %618 = vmatpush1.bf16.msra.mxu1 %v2066_v34  ;;  %v2101_v9 = vld [vmem:[#allocation4 + $0x200] ss:$8 sps:$4 sm:$0xff]   ;;  %v2102_v10 = vld [vmem:[#allocation4 + $0x290] ss:$8 sps:$4 sm:$0xff]  }
  0x4f   :  { %319 = vmatpush1.bf16.msra.mxu0 %v2012_v14  ;;  %619 = vmatprep.subr.bf16.mxu1 %v2067_v36  ;;  %v2103_v11 = vld [vmem:[#allocation4 + $0x210] ss:$8 sps:$4 sm:$0xff]   ;;  %v2104_v12 = vld [vmem:[#allocation4 + $0x2a0] ss:$8 sps:$4 sm:$0xff]  }
  0x50   :  { %320 = vmatprep.subr.bf16.mxu0 %v2013_v15  ;;  %v2105_v13 = vld [vmem:[#allocation4 + $0x220] ss:$8 sps:$4 sm:$0xff]   ;;  %v2106_v14 = vld [vmem:[#allocation4 + $0x2b0] ss:$8 sps:$4 sm:$0xff]  }
  0x51   :  { %v2107_v15 = vld [vmem:[#allocation4 + $0x230] ss:$8 sps:$4 sm:$0xff]   ;;  %v94_v23 = vld [vmem:[#allocation6] ss:$8 sm:$0x3] }
  0x52   :  { %620 = vmatpush1.bf16.msra.mxu1 %v2069_v37  ;;  %v2110_v18 = vld [vmem:[#allocation4 + $0x2d0] ss:$8 sps:$4 sm:$0xff]   ;;  %v2113_v20 = vld [vmem:[#allocation4 + $0x260] ss:$8 sps:$4 sm:$0xff]  }
  0x53   :  { %321 = vmatpush1.bf16.msra.mxu0 %v2015_v16  ;;  %621 = vmatprep.subr.bf16.mxu1 %v2070_v39  ;;  %v2108_v16 = vld [vmem:[#allocation4 + $0x2c0] ss:$8 sps:$4 sm:$0xff]   ;;  %v2111_v19 = vld [vmem:[#allocation4 + $0x250] ss:$8 sps:$4 sm:$0xff]  }
  0x54   :  { %322 = vmatprep.subr.bf16.mxu0 %v2016_v17  ;;  %v2109_v17 = vld [vmem:[#allocation4 + $0x240] ss:$8 sps:$4 sm:$0xff]  }
  0x56   :  { %622 = vmatpush1.bf16.msra.mxu1 %v2072_v41 }
  0x57   :  { %323 = vmatpush1.bf16.msra.mxu0 %v2018_v22  ;;  %623 = vmatprep.subr.bf16.mxu1 %v2073_v43  ;;  %v98_v22 = vsub.s32 0, %v2294_v21 }
  0x58   :  { %324 = vmatprep.subr.bf16.mxu0 %v2019_v24  ;;  %v102_v24 = vsub.s32 1, %v2294_v21 }
  0x59   :  { %v99_v25 = vrot.slane %v94_v23, %v98_v22 }
  0x5a   :  { %624 = vmatpush1.bf16.msra.mxu1 %v2075_v45 }
  0x5b   :  { %325 = vmatpush1.bf16.msra.mxu0 %v2021_v26  ;;  %625 = vmatprep.subr.bf16.mxu1 %v2076_v47  ;;  %v103_v26 = vrot.slane %v94_v23, %v102_v24  ;;  %v2114_v23 = vld [vmem:[#allocation4 + $0x2f0] ss:$8 sps:$4 sm:$0xff]  }
  0x5c   :  { %326 = vmatprep.subr.bf16.mxu0 %v2022_v28 }
  0x5e   :  { %626 = vmatpush1.bf16.msra.mxu1 %v2078_v49 }
  0x5f   :  { %327 = vmatpush1.bf16.msra.mxu0 %v2024_v30  ;;  %627 = vmatprep.subr.bf16.mxu1 %v2079_v51 }
  0x60   :  { %328 = vmatprep.subr.bf16.mxu0 %v2025_v32 }
  0x62   :  { %628 = vmatpush1.bf16.msra.mxu1 %v2081_v53 }
  0x63   :  { %329 = vmatpush1.bf16.msra.mxu0 %v2027_v33  ;;  %629 = vmatprep.subr.bf16.mxu1 %v2082_v55 }
  0x64   :  { %330 = vmatprep.subr.bf16.mxu0 %v2028_v35 }
  0x66   :  { %630 = vmatpush1.bf16.msra.mxu1 %v2084_v56 }
  0x67   :  { %331 = vmatpush1.bf16.msra.mxu0 %v2030_v38  ;;  %631 = vmatprep.subr.bf16.mxu1 %v2085_v57 }
  0x68   :  { %332 = vmatprep.subr.bf16.mxu0 %v2031_v40 }
  0x6a   :  { %632 = vmatpush1.bf16.msra.mxu1 %v2087_v59 }
  0x6b   :  { %333 = vmatpush1.bf16.msra.mxu0 %v2033_v42  ;;  %633 = vmatprep.subr.bf16.mxu1 %v2088_v61 }
  0x6c   :  { %334 = vmatprep.subr.bf16.mxu0 %v2034_v44 }
  0x6e   :  { %634 = vmatpush1.bf16.msra.mxu1 %v2090_v62 }
  0x6f   :  { %335 = vmatpush1.bf16.msra.mxu0 %v2036_v46  ;;  %635 = vmatprep.subr.bf16.mxu1 %v2091_v63 }
  0x70   :  { %336 = vmatprep.subr.bf16.mxu0 %v2037_v48 }
  0x72   :  { %636 = vmatpush1.bf16.msra.mxu1 %v2093_v3 }
  0x73   :  { %337 = vmatpush1.bf16.msra.mxu0 %v2039_v50  ;;  %637 = vmatprep.subr.bf16.mxu1 %v2094_v4 }
  0x74   :  { %1767 = vmatprep.subr.bf16.mxu0 %v2100_v8 }
  0x76   :  { %339 = vmatmul.mubr.bf16.vlgmr.msra.gmra.mrb[0].mxu0 %v2040_v52  ;;  %638 = vmatpush1.bf16.msra.mxu1 %v2096_v5 }
  0x77   :  { %348 = vmatprep.mubr.bf16.mxu0 %v2043_v54  ;;  %639 = vmatprep.subr.bf16.mxu1 %v2097_v6 }
  0x78   :  { %1768 = vmatpush3.bf16.msra.mxu0 %v2101_v9 }
  0x79   :  { %1769 = vmatprep.subr.bf16.mxu0 %v2102_v10 }
  0x7a   :  { %640 = vmatpush1.bf16.msra.mxu1 %v2099_v7 }
  0x7c   :  { %1770 = vmatpush3.bf16.msra.mxu0 %v2103_v11 }
  0x7d   :  { %1771 = vmatprep.subr.bf16.mxu0 %v2104_v12 }
  0x7e   :  { %349 = vmatmul.mubr.bf16.gmra.mrb[4].mxu0 %v2045_v58 }
  0x7f   :  { %358 = vmatprep.mubr.bf16.mxu0 %v2046_v60 }
  0x80   :  { %1772 = vmatpush3.bf16.msra.mxu0 %v2105_v13 }
  0x81   :  { %1773 = vmatprep.subr.bf16.mxu0 %v2106_v14 }
  0x84   :  { %1774 = vmatpush3.bf16.msra.mxu0 %v2107_v15 }
  0x85   :  { %1775 = vmatprep.subr.bf16.mxu0 %v2108_v16 }
  0x86   :  { %359 = vmatmul.mubr.bf16.gmra.mrb[8].mxu0 %v2048_v0 }
  0x87   :  { %368 = vmatprep.mubr.bf16.mxu0 %v2049_v1 }
  0x88   :  { %1776 = vmatpush3.bf16.msra.mxu0 %v2109_v17 }
  0x89   :  { %1777 = vmatprep.subr.bf16.mxu0 %v2110_v18 }
  0x8c   :  { %1778 = vmatpush3.bf16.msra.mxu0 %v2111_v19  ;;  %v2112_v19 = vld [vmem:[#allocation4 + $0x2e0] ss:$8 sps:$4 sm:$0xff]  }
  0x8d   :  { %1779 = vmatprep.subr.bf16.mxu0 %v2112_v19 }
  0x8e   :  { %369 = vmatmul.mubr.bf16.gmra.mrb[12].mxu0 %v2051_v2 }
  0x90   :  { %1780 = vmatpush3.bf16.msra.mxu0 %v2113_v20 }
  0x91   :  { %1781 = vmatprep.subr.bf16.mxu0 %v2114_v23  ;;  %v2119_v23 = vld [vmem:[#allocation4 + $0x330] ss:$8 sps:$4 sm:$0xff]  }
 0x149   :  { %v340_v27 = vpop.f32.mrb[0].mxu0 }
 0x14a   :  { %v341_v28 = vadd.f32 %v340_v27, %v99_v25  ;;  %v342_v29 = vpop.f32.mrb[1].mxu0  ;;  %v2115_v27 = vld [vmem:[#allocation4 + $0x270] ss:$8 sps:$4 sm:$0xff]  }
 0x14b   :  { %v343_v30 = vadd.f32 %v342_v29, %v103_v26  ;;  %v344_v31 = vpop.f32.mrb[2].mxu0  ;;  %1782 = vmatpush3.bf16.msra.mxu0 %v2115_v27  ;;  %v437_v29 = vld [vmem:[#allocation6 + $0x1] ss:$8 sm:$0x3] }
 0x14c   :  { %v345_v32 = vadd.f32 %v344_v31, %v99_v25  ;;  %v346_v33 = vpop.f32.mrb[3].mxu0  ;;  %v379_v35 = vmax.f32 %v341_v28, 0.0  ;;  %v2117_v28 = vld [vmem:[#allocation4 + $0x310] ss:$8 sps:$4 sm:$0xff]   ;;  %v446_v31 = vrot.slane %v437_v29, %v102_v24  ;;  %v2120_v27 = vld [vmem:[#allocation4 + $0x340] ss:$8 sps:$4 sm:$0xff]  }
 0x14d   :  { %v347_v34 = vadd.f32 %v346_v33, %v103_v26  ;;  %v380_v37 = vmax.f32 %v343_v30, 0.0  ;;  %v442_v30 = vrot.slane %v437_v29, %v98_v22  ;;  %v2124_v29 = vld [vmem:[#allocation4 + $0x400] ss:$8 sps:$4 sm:$0xff]  }
 0x14e   :  { %v381_v36 = vmax.f32 %v345_v32, 0.0  ;;  %1891 = vmatprep.subr.bf16.mxu0 %v2124_v29 }
 0x14f   :  { %v382_v38 = vmax.f32 %v347_v34, 0.0 }
 0x150   :  { %v395_v39 = vpack.c.bf16 %v381_v36, %v379_v35 }
 0x151   :  { %v350_v40 = vpop.f32.mrb[4].mxu0  ;;  %v396_v41 = vpack.c.bf16 %v382_v38, %v380_v37 }
 0x152   :  { %v351_v42 = vadd.f32 %v350_v40, %v99_v25  ;;  %v352_v43 = vpop.f32.mrb[5].mxu0 }
 0x153   :  { %v353_v44 = vadd.f32 %v352_v43, %v103_v26  ;;  %v354_v45 = vpop.f32.mrb[6].mxu0  ;;  %641 = vmatprep.mubr.bf16.mxu1 %v396_v41 }
 0x154   :  { %v355_v46 = vadd.f32 %v354_v45, %v99_v25  ;;  %v356_v47 = vpop.f32.mrb[7].mxu0  ;;  %642 = vmatmul.mubr.bf16.vlgmr.msra.gmra.mrb[0].mxu1 %v395_v39  ;;  %v383_v49 = vmax.f32 %v351_v42, 0.0 }
 0x155   :  { %v357_v48 = vadd.f32 %v356_v47, %v103_v26  ;;  %v384_v51 = vmax.f32 %v353_v44, 0.0 }
 0x156   :  { %v385_v50 = vmax.f32 %v355_v46, 0.0 }
 0x157   :  { %v386_v52 = vmax.f32 %v357_v48, 0.0 }
 0x158   :  { %v397_v53 = vpack.c.bf16 %v385_v50, %v383_v49 }
 0x159   :  { %v398_v54 = vpack.c.bf16 %v386_v52, %v384_v51  ;;  %v360_v55 = vpop.f32.mrb[8].mxu0 }
 0x15a   :  { %v361_v56 = vadd.f32 %v360_v55, %v99_v25  ;;  %v362_v57 = vpop.f32.mrb[9].mxu0 }
 0x15b   :  { %v363_v58 = vadd.f32 %v362_v57, %v103_v26  ;;  %v364_v59 = vpop.f32.mrb[10].mxu0  ;;  %651 = vmatprep.mubr.bf16.mxu1 %v398_v54 }
 0x15c   :  { %v365_v60 = vadd.f32 %v364_v59, %v99_v25  ;;  %v366_v61 = vpop.f32.mrb[11].mxu0  ;;  %652 = vmatmul.mubr.bf16.gmra.mrb[4].mxu1 %v397_v53  ;;  %v387_v63 = vmax.f32 %v361_v56, 0.0 }
 0x15d   :  { %v367_v62 = vadd.f32 %v366_v61, %v103_v26  ;;  %v388_v1 = vmax.f32 %v363_v58, 0.0 }
 0x15e   :  { %v389_v0 = vmax.f32 %v365_v60, 0.0 }
 0x15f   :  { %v390_v2 = vmax.f32 %v367_v62, 0.0 }
 0x160   :  { %v399_v3 = vpack.c.bf16 %v389_v0, %v387_v63 }
 0x161   :  { %v400_v4 = vpack.c.bf16 %v390_v2, %v388_v1  ;;  %v370_v5 = vpop.f32.mrb[12].mxu0 }
 0x162   :  { %v371_v6 = vadd.f32 %v370_v5, %v99_v25  ;;  %v372_v7 = vpop.f32.mrb[13].mxu0 }
 0x163   :  { %v373_v8 = vadd.f32 %v372_v7, %v103_v26  ;;  %v374_v9 = vpop.f32.mrb[14].mxu0  ;;  %661 = vmatprep.mubr.bf16.mxu1 %v400_v4 }
 0x164   :  { %v375_v10 = vadd.f32 %v374_v9, %v99_v25  ;;  %v376_v11 = vpop.f32.mrb[15].mxu0  ;;  %662 = vmatmul.mubr.bf16.gmra.mrb[8].mxu1 %v399_v3  ;;  %v391_v13 = vmax.f32 %v371_v6, 0.0  ;;  %v2116_v25 = vld [vmem:[#allocation4 + $0x300] ss:$8 sps:$4 sm:$0xff]  }
 0x165   :  { %v377_v12 = vadd.f32 %v376_v11, %v103_v26  ;;  %v392_v15 = vmax.f32 %v373_v8, 0.0  ;;  %1867 = vmatprep.subr.bf16.mxu1 %v2116_v25  ;;  %v2118_v26 = vld [vmem:[#allocation4 + $0x320] ss:$8 sps:$4 sm:$0xff]  }
 0x166   :  { %v393_v14 = vmax.f32 %v375_v10, 0.0  ;;  %1868 = vmatpush3.bf16.msra.mxu1 %v2116_v25  ;;  %v2121_v25 = vld [vmem:[#allocation4 + $0x350] ss:$8 sps:$4 sm:$0xff]  }
 0x167   :  { %v394_v16 = vmax.f32 %v377_v12, 0.0  ;;  %1869 = vmatprep.subr.bf16.mxu1 %v2117_v28 }
 0x168   :  { %v401_v17 = vpack.c.bf16 %v393_v14, %v391_v13 }
 0x169   :  { %v402_v18 = vpack.c.bf16 %v394_v16, %v392_v15 }
 0x16a   :  { %1870 = vmatpush3.bf16.msra.mxu1 %v2117_v28  ;;  %v2122_v28 = vld [vmem:[#allocation4 + $0x360] ss:$8 sps:$4 sm:$0xff]  }
 0x16b   :  { %671 = vmatprep.mubr.bf16.mxu1 %v402_v18  ;;  %1871 = vmatprep.subr.bf16.mxu1 %v2118_v26 }
 0x16c   :  { %672 = vmatmul.mubr.bf16.gmra.mrb[12].mxu1 %v401_v17 }
 0x16e   :  { %1872 = vmatpush3.bf16.msra.mxu1 %v2118_v26  ;;  %v2123_v26 = vld [vmem:[#allocation4 + $0x370] ss:$8 sps:$4 sm:$0xff]  }
 0x16f   :  { %1873 = vmatprep.subr.bf16.mxu1 %v2119_v23 }
 0x172   :  { %1874 = vmatpush3.bf16.msra.mxu1 %v2119_v23  ;;  %v930_v23 = vld [vmem:[#allocation6 + $0x3] ss:$0 sm:$0xff] }
 0x173   :  { %1875 = vmatprep.subr.bf16.mxu1 %v2120_v27 }
 0x176   :  { %1876 = vmatpush3.bf16.msra.mxu1 %v2120_v27 }
 0x177   :  { %1877 = vmatprep.subr.bf16.mxu1 %v2121_v25 }
 0x17a   :  { %1878 = vmatpush3.bf16.msra.mxu1 %v2121_v25 }
 0x17b   :  { %1879 = vmatprep.subr.bf16.mxu1 %v2122_v28 }
 0x17e   :  { %1880 = vmatpush3.bf16.msra.mxu1 %v2122_v28 }
 0x17f   :  { %1881 = vmatprep.subr.bf16.mxu1 %v2123_v26 }
 0x182   :  { %1882 = vmatpush3.bf16.msra.mxu1 %v2123_v26 }
 0x227   :  { %v643_v32 = vpop.f32.mrb[0].mxu1 }
 0x228   :  { %v644_v33 = vadd.f32 %v643_v32, %v442_v30  ;;  %v645_v34 = vpop.f32.mrb[1].mxu1  ;;  %v2127_v32 = vld [vmem:[#allocation4 + $0x430] ss:$8 sps:$4 sm:$0xff]  }
 0x229   :  { %v646_v35 = vadd.f32 %v645_v34, %v446_v31  ;;  %v647_v36 = vpop.f32.mrb[2].mxu1  ;;  %v2129_v34 = vld [vmem:[#allocation4 + $0x450] ss:$8 sps:$4 sm:$0xff]  }
 0x22a   :  { %v648_v37 = vadd.f32 %v647_v36, %v442_v30  ;;  %v649_v38 = vpop.f32.mrb[3].mxu1  ;;  %v682_v40 = vmax.f32 %v644_v33, 0.0  ;;  %v2128_v33 = vld [vmem:[#allocation4 + $0x440] ss:$8 sps:$4 sm:$0xff]  }
 0x22b   :  { %v650_v39 = vadd.f32 %v649_v38, %v446_v31  ;;  %v683_v42 = vmax.f32 %v646_v35, 0.0  ;;  %v739_v36 = vld [vmem:[#allocation6 + $0x2] ss:$0 sm:$0xff] }
 0x22c   :  { %v684_v41 = vmax.f32 %v648_v37, 0.0 }
 0x22d   :  { %v685_v43 = vmax.f32 %v650_v39, 0.0 }
 0x22e   :  { %v698_v44 = vpack.c.bf16 %v684_v41, %v682_v40 }
 0x22f   :  { %v699_v45 = vpack.c.bf16 %v685_v43, %v683_v42  ;;  %v653_v46 = vpop.f32.mrb[4].mxu1 }
 0x230   :  { %v654_v47 = vadd.f32 %v653_v46, %v442_v30  ;;  %v655_v22 = vpop.f32.mrb[5].mxu1 }
 0x231   :  { %v656_v48 = vadd.f32 %v655_v22, %v446_v31  ;;  %v657_v21 = vpop.f32.mrb[6].mxu1  ;;  %868 = vmatprep.mubr.bf16.mxu0 %v699_v45 }
 0x232   :  { %v658_v24 = vadd.f32 %v657_v21, %v442_v30  ;;  %v659_v49 = vpop.f32.mrb[7].mxu1  ;;  %869 = vmatmul.mubr.bf16.vlgmr.msra.gmra.mrb[16].mxu0 %v698_v44  ;;  %v686_v51 = vmax.f32 %v654_v47, 0.0 }
 0x233   :  { %v660_v50 = vadd.f32 %v659_v49, %v446_v31  ;;  %v687_v53 = vmax.f32 %v656_v48, 0.0  ;;  %1892 = vmatpush3.bf16.msra.mxu0 %v2124_v29 }
 0x234   :  { %v688_v52 = vmax.f32 %v658_v24, 0.0 }
 0x235   :  { %v689_v54 = vmax.f32 %v660_v50, 0.0 }
 0x236   :  { %v700_v55 = vpack.c.bf16 %v688_v52, %v686_v51 }
 0x237   :  { %v701_v56 = vpack.c.bf16 %v689_v54, %v687_v53  ;;  %v663_v57 = vpop.f32.mrb[8].mxu1 }
 0x238   :  { %v664_v58 = vadd.f32 %v663_v57, %v442_v30  ;;  %v665_v59 = vpop.f32.mrb[9].mxu1 }
 0x239   :  { %v666_v60 = vadd.f32 %v665_v59, %v446_v31  ;;  %v667_v61 = vpop.f32.mrb[10].mxu1  ;;  %876 = vmatprep.mubr.bf16.mxu0 %v701_v56 }
 0x23a   :  { %v668_v62 = vadd.f32 %v667_v61, %v442_v30  ;;  %v669_v63 = vpop.f32.mrb[11].mxu1  ;;  %877 = vmatmul.mubr.bf16.gmra.mrb[20].mxu0 %v700_v55  ;;  %v690_v1 = vmax.f32 %v664_v58, 0.0 }
 0x23b   :  { %v670_v0 = vadd.f32 %v669_v63, %v446_v31  ;;  %v691_v3 = vmax.f32 %v666_v60, 0.0 }
 0x23c   :  { %v692_v2 = vmax.f32 %v668_v62, 0.0 }
 0x23d   :  { %v693_v4 = vmax.f32 %v670_v0, 0.0 }
 0x23e   :  { %v702_v5 = vpack.c.bf16 %v692_v2, %v690_v1 }
 0x23f   :  { %v703_v6 = vpack.c.bf16 %v693_v4, %v691_v3  ;;  %v673_v7 = vpop.f32.mrb[12].mxu1 }
 0x240   :  { %v674_v8 = vadd.f32 %v673_v7, %v442_v30  ;;  %v675_v9 = vpop.f32.mrb[13].mxu1 }
 0x241   :  { %v676_v10 = vadd.f32 %v675_v9, %v446_v31  ;;  %v677_v11 = vpop.f32.mrb[14].mxu1  ;;  %884 = vmatprep.mubr.bf16.mxu0 %v703_v6 }
 0x242   :  { %v678_v12 = vadd.f32 %v677_v11, %v442_v30  ;;  %v679_v13 = vpop.f32.mrb[15].mxu1  ;;  %885 = vmatmul.mubr.bf16.gmra.mrb[24].mxu0 %v702_v5  ;;  %v694_v15 = vmax.f32 %v674_v8, 0.0  ;;  %v2125_v30 = vld [vmem:[#allocation4 + $0x410] ss:$8 sps:$4 sm:$0xff]  }
 0x243   :  { %v680_v14 = vadd.f32 %v679_v13, %v446_v31  ;;  %v695_v17 = vmax.f32 %v676_v10, 0.0  ;;  %1893 = vmatprep.subr.bf16.mxu0 %v2125_v30  ;;  %v2126_v31 = vld [vmem:[#allocation4 + $0x420] ss:$8 sps:$4 sm:$0xff]  }
 0x244   :  { %v696_v16 = vmax.f32 %v678_v12, 0.0  ;;  %1894 = vmatpush3.bf16.msra.mxu0 %v2125_v30  ;;  %v2130_v13 = vld [vmem:[#allocation4 + $0x460] ss:$8 sps:$4 sm:$0xff]  }
 0x245   :  { %v697_v18 = vmax.f32 %v680_v14, 0.0  ;;  %1895 = vmatprep.subr.bf16.mxu0 %v2126_v31  ;;  %v2131_v14 = vld [vmem:[#allocation4 + $0x470] ss:$8 sps:$4 sm:$0xff]  }
 0x246   :  { %v704_v19 = vpack.c.bf16 %v696_v16, %v694_v15  ;;  %v2132_v15 = vld [vmem:[#allocation4 + $0x500] ss:$8 sps:$4 sm:$0xff]   ;;  %v2133_v16 = vld [vmem:[#allocation4 + $0x510] ss:$8 sps:$4 sm:$0xff]  }
 0x247   :  { %v705_v20 = vpack.c.bf16 %v697_v18, %v695_v17  ;;  %1915 = vmatprep.subr.bf16.mxu1 %v2132_v15  ;;  %v2134_v17 = vld [vmem:[#allocation4 + $0x520] ss:$8 sps:$4 sm:$0xff]   ;;  %v2135_v18 = vld [vmem:[#allocation4 + $0x530] ss:$8 sps:$4 sm:$0xff]  }
 0x248   :  { %1896 = vmatpush3.bf16.msra.mxu0 %v2126_v31 }
 0x249   :  { %892 = vmatprep.mubr.bf16.mxu0 %v705_v20  ;;  %1897 = vmatprep.subr.bf16.mxu0 %v2127_v32  ;;  %v2137_v20 = vld [vmem:[#allocation4 + $0x550] ss:$8 sps:$4 sm:$0xff]  }
 0x24a   :  { %893 = vmatmul.mubr.bf16.gmra.mrb[28].mxu0 %v704_v19  ;;  %v2136_v19 = vld [vmem:[#allocation4 + $0x540] ss:$8 sps:$4 sm:$0xff]  }
 0x24c   :  { %1898 = vmatpush3.bf16.msra.mxu0 %v2127_v32 }
 0x24d   :  { %1899 = vmatprep.subr.bf16.mxu0 %v2128_v33 }
 0x250   :  { %1900 = vmatpush3.bf16.msra.mxu0 %v2128_v33 }
 0x251   :  { %1901 = vmatprep.subr.bf16.mxu0 %v2129_v34 }
 0x254   :  { %1902 = vmatpush3.bf16.msra.mxu0 %v2129_v34 }
 0x255   :  { %1903 = vmatprep.subr.bf16.mxu0 %v2130_v13 }
 0x258   :  { %1904 = vmatpush3.bf16.msra.mxu0 %v2130_v13 }
 0x259   :  { %1905 = vmatprep.subr.bf16.mxu0 %v2131_v14 }
 0x25c   :  { %1906 = vmatpush3.bf16.msra.mxu0 %v2131_v14 }
 0x305   :  { %v1783_v35 = vpop.f32.mrb[16].mxu0 }
 0x306   :  { %v1784_v37 = vpop.f32.mrb[17].mxu0 }
 0x307   :  { %v1785_v38 = vadd.f32 %v1784_v37, %v1783_v35  ;;  %v1786_v39 = vpop.f32.mrb[18].mxu0 }
 0x308   :  { %v1787_v40 = vpop.f32.mrb[19].mxu0 }
 0x309   :  { %v871_v41 = vadd.f32 %v1785_v38, %v739_v36  ;;  %v1788_v42 = vadd.f32 %v1787_v40, %v1786_v39 }
 0x30b   :  { %v874_v43 = vadd.f32 %v1788_v42, %v739_v36  ;;  %v901_v44 = vmax.f32 %v871_v41, 0.0 }
 0x30d   :  { %v902_v45 = vmax.f32 %v874_v43, 0.0  ;;  %v1789_v46 = vpop.f32.mrb[20].mxu0 }
 0x30e   :  { %v1790_v47 = vpop.f32.mrb[21].mxu0 }
 0x30f   :  { %v1791_v22 = vadd.f32 %v1790_v47, %v1789_v46  ;;  %v1792_v48 = vpop.f32.mrb[22].mxu0  ;;  %v909_v21 = vpack.c.bf16 %v902_v45, %v901_v44 }
 0x310   :  { %v1793_v24 = vpop.f32.mrb[23].mxu0 }
 0x311   :  { %v879_v49 = vadd.f32 %v1791_v22, %v739_v36  ;;  %v1794_v50 = vadd.f32 %v1793_v24, %v1792_v48  ;;  %1883 = vmatprep.mubr.bf16.mxu1 %v909_v21 }
 0x313   :  { %v882_v51 = vadd.f32 %v1794_v50, %v739_v36  ;;  %v903_v52 = vmax.f32 %v879_v49, 0.0  ;;  %v2138_v50 = vld [vmem:[#allocation4 + $0x560] ss:$8 sps:$4 sm:$0xff]  }
 0x315   :  { %v904_v53 = vmax.f32 %v882_v51, 0.0  ;;  %v1795_v54 = vpop.f32.mrb[24].mxu0  ;;  %v2139_v51 = vld [vmem:[#allocation4 + $0x570] ss:$8 sps:$4 sm:$0xff]  }
 0x316   :  { %v1796_v55 = vpop.f32.mrb[25].mxu0 }
 0x317   :  { %v910_v56 = vpack.c.bf16 %v904_v53, %v903_v52  ;;  %v1797_v57 = vadd.f32 %v1796_v55, %v1795_v54  ;;  %v1798_v58 = vpop.f32.mrb[26].mxu0  ;;  %v2140_v52 = vld [vmem:[#allocation4 + $0x600] ss:$8 sps:$4 sm:$0xff]   ;;  %v2141_v53 = vld [vmem:[#allocation4 + $0x610] ss:$8 sps:$4 sm:$0xff]  }
 0x318   :  { %v1799_v59 = vpop.f32.mrb[27].mxu0  ;;  %1939 = vmatprep.subr.bf16.mxu0 %v2140_v52  ;;  %v2142_v54 = vld [vmem:[#allocation4 + $0x620] ss:$8 sps:$4 sm:$0xff]   ;;  %v2143_v55 = vld [vmem:[#allocation4 + $0x630] ss:$8 sps:$4 sm:$0xff]  }
 0x319   :  { %v887_v60 = vadd.f32 %v1797_v57, %v739_v36  ;;  %v1800_v61 = vadd.f32 %v1799_v59, %v1798_v58  ;;  %1884 = vmatmul.mubr.bf16.vlgmr.msra.gmra.mrb[16].mxu1 %v910_v56  ;;  %v2144_v56 = vld [vmem:[#allocation4 + $0x640] ss:$8 sps:$4 sm:$0xff]   ;;  %v2145_v57 = vld [vmem:[#allocation4 + $0x650] ss:$8 sps:$4 sm:$0xff]   ;;  %v1073_v58 = vld [vmem:[#allocation6 + $0x4] ss:$0 sm:$0xff] }
 0x31a   :  { %1916 = vmatpush3.bf16.msra.mxu1 %v2132_v15 }
 0x31b   :  { %v890_v62 = vadd.f32 %v1800_v61, %v739_v36  ;;  %v905_v63 = vmax.f32 %v887_v60, 0.0  ;;  %1917 = vmatprep.subr.bf16.mxu1 %v2133_v16 }
 0x31d   :  { %v906_v0 = vmax.f32 %v890_v62, 0.0  ;;  %v1801_v1 = vpop.f32.mrb[28].mxu0 }
 0x31e   :  { %v1802_v2 = vpop.f32.mrb[29].mxu0  ;;  %1918 = vmatpush3.bf16.msra.mxu1 %v2133_v16 }
 0x31f   :  { %v1803_v3 = vadd.f32 %v1802_v2, %v1801_v1  ;;  %v1804_v4 = vpop.f32.mrb[30].mxu0  ;;  %v911_v5 = vpack.c.bf16 %v906_v0, %v905_v63  ;;  %1919 = vmatprep.subr.bf16.mxu1 %v2134_v17 }
 0x320   :  { %v1805_v6 = vpop.f32.mrb[31].mxu0 }
 0x321   :  { %v895_v7 = vadd.f32 %v1803_v3, %v739_v36  ;;  %v1806_v8 = vadd.f32 %v1805_v6, %v1804_v4  ;;  %1887 = vmatprep.mubr.bf16.mxu1 %v911_v5 }
 0x322   :  { %1920 = vmatpush3.bf16.msra.mxu1 %v2134_v17 }
 0x323   :  { %v898_v9 = vadd.f32 %v1806_v8, %v739_v36  ;;  %v907_v10 = vmax.f32 %v895_v7, 0.0  ;;  %1921 = vmatprep.subr.bf16.mxu1 %v2135_v18 }
 0x325   :  { %v908_v11 = vmax.f32 %v898_v9, 0.0 }
 0x326   :  { %1922 = vmatpush3.bf16.msra.mxu1 %v2135_v18 }
 0x327   :  { %v912_v12 = vpack.c.bf16 %v908_v11, %v907_v10  ;;  %1923 = vmatprep.subr.bf16.mxu1 %v2136_v19 }
 0x329   :  { %1888 = vmatmul.mubr.bf16.gmra.mrb[20].mxu1 %v912_v12 }
 0x32a   :  { %1924 = vmatpush3.bf16.msra.mxu1 %v2136_v19 }
 0x32b   :  { %1925 = vmatprep.subr.bf16.mxu1 %v2137_v20 }
 0x32e   :  { %1926 = vmatpush3.bf16.msra.mxu1 %v2137_v20 }
 0x32f   :  { %1927 = vmatprep.subr.bf16.mxu1 %v2138_v50 }
 0x332   :  { %1928 = vmatpush3.bf16.msra.mxu1 %v2138_v50 }
 0x333   :  { %1929 = vmatprep.subr.bf16.mxu1 %v2139_v51 }
 0x336   :  { %1930 = vmatpush3.bf16.msra.mxu1 %v2139_v51 }
 0x3ec   :  { %v1885_v27 = vpop.f32.mrb[16].mxu1 }
 0x3ed   :  { %v1022_v25 = vadd.f32 %v1885_v27, %v930_v23  ;;  %v1013_v28 = vpop.f32.mrb[17].mxu1 }
 0x3ee   :  { %v1014_v26 = vadd.f32 %v1013_v28, %v930_v23  ;;  %v1886_v29 = vpop.f32.mrb[18].mxu1  ;;  %v2147_v28 = vld [vmem:[#allocation4 + $0x670] ss:$8 sps:$4 sm:$0xff]  }
 0x3ef   :  { %v1025_v30 = vadd.f32 %v1886_v29, %v930_v23  ;;  %v1016_v31 = vpop.f32.mrb[19].mxu1  ;;  %v1046_v33 = vmax.f32 %v1022_v25, 0.0  ;;  %v2146_v25 = vld [vmem:[#allocation4 + $0x660] ss:$8 sps:$4 sm:$0xff]   ;;  %v2149_v29 = vld [vmem:[#allocation4 + $0x710] ss:$8 sps:$4 sm:$0xff]  }
 0x3f0   :  { %v1017_v32 = vadd.f32 %v1016_v31, %v930_v23  ;;  %v1044_v35 = vmax.f32 %v1014_v26, 0.0  ;;  %v2148_v26 = vld [vmem:[#allocation4 + $0x700] ss:$8 sps:$4 sm:$0xff]   ;;  %v2151_v31 = vld [vmem:[#allocation4 + $0x730] ss:$8 sps:$4 sm:$0xff]  }
 0x3f1   :  { %v1047_v34 = vmax.f32 %v1025_v30, 0.0  ;;  %1963 = vmatprep.subr.bf16.mxu1 %v2148_v26  ;;  %v2150_v30 = vld [vmem:[#allocation4 + $0x720] ss:$8 sps:$4 sm:$0xff]  }
 0x3f2   :  { %v1045_v36 = vmax.f32 %v1017_v32, 0.0  ;;  %v2152_v32 = vld [vmem:[#allocation4 + $0x740] ss:$8 sps:$4 sm:$0xff]  }
 0x3f3   :  { %v1053_v37 = vpack.c.bf16 %v1047_v34, %v1046_v33  ;;  %v2153_v33 = vld [vmem:[#allocation4 + $0x750] ss:$8 sps:$4 sm:$0xff]   ;;  %v1216_v34 = vld [vmem:[#allocation6 + $0x5] ss:$0 sm:$0xff] }
 0x3f4   :  { %v1052_v38 = vpack.c.bf16 %v1045_v36, %v1044_v35 }
 0x3f6   :  { %1907 = vmatprep.mubr.bf16.mxu0 %v1052_v38 }
 0x3f7   :  { %1908 = vmatmul.mubr.bf16.vlgmr.msra.gmra.mrb[32].mxu0 %v1053_v37 }
 0x3f8   :  { %1940 = vmatpush3.bf16.msra.mxu0 %v2140_v52 }
 0x3f9   :  { %1941 = vmatprep.subr.bf16.mxu0 %v2141_v53 }
 0x3fc   :  { %v1889_v39 = vpop.f32.mrb[20].mxu1  ;;  %1942 = vmatpush3.bf16.msra.mxu0 %v2141_v53 }
 0x3fd   :  { %v1038_v40 = vadd.f32 %v1889_v39, %v930_v23  ;;  %v1029_v41 = vpop.f32.mrb[21].mxu1  ;;  %1943 = vmatprep.subr.bf16.mxu0 %v2142_v54 }
 0x3fe   :  { %v1030_v42 = vadd.f32 %v1029_v41, %v930_v23  ;;  %v1890_v43 = vpop.f32.mrb[22].mxu1 }
 0x3ff   :  { %v1041_v44 = vadd.f32 %v1890_v43, %v930_v23  ;;  %v1032_v45 = vpop.f32.mrb[23].mxu1  ;;  %v1050_v47 = vmax.f32 %v1038_v40, 0.0 }
 0x400   :  { %v1033_v46 = vadd.f32 %v1032_v45, %v930_v23  ;;  %v1048_v48 = vmax.f32 %v1030_v42, 0.0  ;;  %1944 = vmatpush3.bf16.msra.mxu0 %v2142_v54 }
 0x401   :  { %v1051_v22 = vmax.f32 %v1041_v44, 0.0  ;;  %1945 = vmatprep.subr.bf16.mxu0 %v2143_v55 }
 0x402   :  { %v1049_v21 = vmax.f32 %v1033_v46, 0.0 }
 0x403   :  { %v1055_v24 = vpack.c.bf16 %v1051_v22, %v1050_v47 }
 0x404   :  { %v1054_v49 = vpack.c.bf16 %v1049_v21, %v1048_v48  ;;  %1946 = vmatpush3.bf16.msra.mxu0 %v2143_v55 }
 0x405   :  { %1947 = vmatprep.subr.bf16.mxu0 %v2144_v56 }
 0x406   :  { %1911 = vmatprep.mubr.bf16.mxu0 %v1054_v49 }
 0x407   :  { %1912 = vmatmul.mubr.bf16.gmra.mrb[36].mxu0 %v1055_v24 }
 0x408   :  { %1948 = vmatpush3.bf16.msra.mxu0 %v2144_v56 }
 0x409   :  { %1949 = vmatprep.subr.bf16.mxu0 %v2145_v57 }
 0x40c   :  { %1950 = vmatpush3.bf16.msra.mxu0 %v2145_v57 }
 0x40d   :  { %1951 = vmatprep.subr.bf16.mxu0 %v2146_v25 }
 0x410   :  { %1952 = vmatpush3.bf16.msra.mxu0 %v2146_v25 }
 0x411   :  { %1953 = vmatprep.subr.bf16.mxu0 %v2147_v28 }
 0x414   :  { %1954 = vmatpush3.bf16.msra.mxu0 %v2147_v28 }
 0x4ca   :  { %v1909_v59 = vpop.f32.mrb[32].mxu0 }
 0x4cb   :  { %v1165_v60 = vadd.f32 %v1909_v59, %v1073_v58  ;;  %v1156_v61 = vpop.f32.mrb[33].mxu0 }
 0x4cc   :  { %v1157_v62 = vadd.f32 %v1156_v61, %v1073_v58  ;;  %v1910_v63 = vpop.f32.mrb[34].mxu0  ;;  %v2155_v61 = vld [vmem:[#allocation4 + $0x770] ss:$8 sps:$4 sm:$0xff]  }
 0x4cd   :  { %v1168_v0 = vadd.f32 %v1910_v63, %v1073_v58  ;;  %v1159_v1 = vpop.f32.mrb[35].mxu0  ;;  %v1189_v3 = vmax.f32 %v1165_v60, 0.0  ;;  %v2154_v60 = vld [vmem:[#allocation4 + $0x760] ss:$8 sps:$4 sm:$0xff]  }
 0x4ce   :  { %v1160_v2 = vadd.f32 %v1159_v1, %v1073_v58  ;;  %v1187_v5 = vmax.f32 %v1157_v62, 0.0  ;;  %v1359_v62 = vld [vmem:[#allocation6 + $0x6] ss:$0 sm:$0xff] }
 0x4cf   :  { %v1190_v4 = vmax.f32 %v1168_v0, 0.0 }
 0x4d0   :  { %v1188_v6 = vmax.f32 %v1160_v2, 0.0 }
 0x4d1   :  { %v1196_v7 = vpack.c.bf16 %v1190_v4, %v1189_v3 }
 0x4d2   :  { %v1195_v8 = vpack.c.bf16 %v1188_v6, %v1187_v5 }
 0x4d4   :  { %1931 = vmatprep.mubr.bf16.mxu1 %v1195_v8 }
 0x4d5   :  { %1932 = vmatmul.mubr.bf16.vlgmr.msra.gmra.mrb[24].mxu1 %v1196_v7 }
 0x4d6   :  { %1964 = vmatpush3.bf16.msra.mxu1 %v2148_v26 }
 0x4d7   :  { %1965 = vmatprep.subr.bf16.mxu1 %v2149_v29 }
 0x4da   :  { %v1913_v9 = vpop.f32.mrb[36].mxu0  ;;  %1966 = vmatpush3.bf16.msra.mxu1 %v2149_v29 }
 0x4db   :  { %v1181_v10 = vadd.f32 %v1913_v9, %v1073_v58  ;;  %v1172_v11 = vpop.f32.mrb[37].mxu0  ;;  %1967 = vmatprep.subr.bf16.mxu1 %v2150_v30 }
 0x4dc   :  { %v1173_v12 = vadd.f32 %v1172_v11, %v1073_v58  ;;  %v1914_v13 = vpop.f32.mrb[38].mxu0 }
 0x4dd   :  { %v1184_v14 = vadd.f32 %v1914_v13, %v1073_v58  ;;  %v1175_v15 = vpop.f32.mrb[39].mxu0  ;;  %v1193_v17 = vmax.f32 %v1181_v10, 0.0 }
 0x4de   :  { %v1176_v16 = vadd.f32 %v1175_v15, %v1073_v58  ;;  %v1191_v19 = vmax.f32 %v1173_v12, 0.0  ;;  %1968 = vmatpush3.bf16.msra.mxu1 %v2150_v30  ;;  %v1502_v30 = vld [vmem:[#allocation6 + $0x7] ss:$0 sm:$0xff] }
 0x4df   :  { %v1194_v18 = vmax.f32 %v1184_v14, 0.0  ;;  %1969 = vmatprep.subr.bf16.mxu1 %v2151_v31 }
 0x4e0   :  { %v1192_v20 = vmax.f32 %v1176_v16, 0.0 }
 0x4e1   :  { %v1198_v23 = vpack.c.bf16 %v1194_v18, %v1193_v17 }
 0x4e2   :  { %v1197_v27 = vpack.c.bf16 %v1192_v20, %v1191_v19  ;;  %1970 = vmatpush3.bf16.msra.mxu1 %v2151_v31 }
 0x4e3   :  { %1971 = vmatprep.subr.bf16.mxu1 %v2152_v32 }
 0x4e4   :  { %1935 = vmatprep.mubr.bf16.mxu1 %v1197_v27 }
 0x4e5   :  { %1936 = vmatmul.mubr.bf16.gmra.mrb[28].mxu1 %v1198_v23 }
 0x4e6   :  { %1972 = vmatpush3.bf16.msra.mxu1 %v2152_v32 }
 0x4e7   :  { %1973 = vmatprep.subr.bf16.mxu1 %v2153_v33 }
 0x4ea   :  { %1974 = vmatpush3.bf16.msra.mxu1 %v2153_v33 }
 0x4eb   :  { %1975 = vmatprep.subr.bf16.mxu1 %v2154_v60 }
 0x4ee   :  { %1976 = vmatpush3.bf16.msra.mxu1 %v2154_v60 }
 0x4ef   :  { %1977 = vmatprep.subr.bf16.mxu1 %v2155_v61 }
 0x4f2   :  { %1978 = vmatpush3.bf16.msra.mxu1 %v2155_v61 }
 0x5a8   :  { %v1933_v35 = vpop.f32.mrb[24].mxu1 }
 0x5a9   :  { %v1308_v36 = vadd.f32 %v1933_v35, %v1216_v34  ;;  %v1299_v37 = vpop.f32.mrb[25].mxu1 }
 0x5aa   :  { %v1300_v38 = vadd.f32 %v1299_v37, %v1216_v34  ;;  %v1934_v39 = vpop.f32.mrb[26].mxu1 }
 0x5ab   :  { %v1311_v40 = vadd.f32 %v1934_v39, %v1216_v34  ;;  %v1302_v41 = vpop.f32.mrb[27].mxu1  ;;  %v1332_v43 = vmax.f32 %v1308_v36, 0.0 }
 0x5ac   :  { %v1303_v42 = vadd.f32 %v1302_v41, %v1216_v34  ;;  %v1330_v45 = vmax.f32 %v1300_v38, 0.0 }
 0x5ad   :  { %v1333_v44 = vmax.f32 %v1311_v40, 0.0 }
 0x5ae   :  { %v1331_v46 = vmax.f32 %v1303_v42, 0.0 }
 0x5af   :  { %v1339_v47 = vpack.c.bf16 %v1333_v44, %v1332_v43 }
 0x5b0   :  { %v1338_v22 = vpack.c.bf16 %v1331_v46, %v1330_v45 }
 0x5b2   :  { %1955 = vmatprep.mubr.bf16.mxu0 %v1338_v22 }
 0x5b3   :  { %1956 = vmatmul.mubr.bf16.vlgmr.msra.gmra.mrb[40].mxu0 %v1339_v47 }
 0x5b8   :  { %v1937_v48 = vpop.f32.mrb[28].mxu1 }
 0x5b9   :  { %v1324_v21 = vadd.f32 %v1937_v48, %v1216_v34  ;;  %v1315_v24 = vpop.f32.mrb[29].mxu1 }
 0x5ba   :  { %v1316_v49 = vadd.f32 %v1315_v24, %v1216_v34  ;;  %v1938_v50 = vpop.f32.mrb[30].mxu1 }
 0x5bb   :  { %v1327_v51 = vadd.f32 %v1938_v50, %v1216_v34  ;;  %v1318_v52 = vpop.f32.mrb[31].mxu1  ;;  %v1336_v54 = vmax.f32 %v1324_v21, 0.0 }
 0x5bc   :  { %v1319_v53 = vadd.f32 %v1318_v52, %v1216_v34  ;;  %v1334_v56 = vmax.f32 %v1316_v49, 0.0 }
 0x5bd   :  { %v1337_v55 = vmax.f32 %v1327_v51, 0.0 }
 0x5be   :  { %v1335_v57 = vmax.f32 %v1319_v53, 0.0 }
 0x5bf   :  { %v1341_v58 = vpack.c.bf16 %v1337_v55, %v1336_v54 }
 0x5c0   :  { %v1340_v59 = vpack.c.bf16 %v1335_v57, %v1334_v56 }
 0x5c2   :  { %1959 = vmatprep.mubr.bf16.mxu0 %v1340_v59 }
 0x5c3   :  { %1960 = vmatmul.mubr.bf16.gmra.mrb[44].mxu0 %v1341_v58 }
 0x686   :  { %v1957_v63 = vpop.f32.mrb[40].mxu0 }
 0x687   :  { %v1451_v0 = vadd.f32 %v1957_v63, %v1359_v62  ;;  %v1442_v1 = vpop.f32.mrb[41].mxu0 }
 0x688   :  { %v1443_v2 = vadd.f32 %v1442_v1, %v1359_v62  ;;  %v1958_v3 = vpop.f32.mrb[42].mxu0 }
 0x689   :  { %v1454_v4 = vadd.f32 %v1958_v3, %v1359_v62  ;;  %v1445_v5 = vpop.f32.mrb[43].mxu0  ;;  %v1475_v7 = vmax.f32 %v1451_v0, 0.0 }
 0x68a   :  { %v1446_v6 = vadd.f32 %v1445_v5, %v1359_v62  ;;  %v1473_v9 = vmax.f32 %v1443_v2, 0.0 }
 0x68b   :  { %v1476_v8 = vmax.f32 %v1454_v4, 0.0 }
 0x68c   :  { %v1474_v10 = vmax.f32 %v1446_v6, 0.0 }
 0x68d   :  { %v1482_v11 = vpack.c.bf16 %v1476_v8, %v1475_v7 }
 0x68e   :  { %v1481_v12 = vpack.c.bf16 %v1474_v10, %v1473_v9 }
 0x690   :  { %1979 = vmatprep.mubr.bf16.mxu1 %v1481_v12 }
 0x691   :  { %1980 = vmatmul.mubr.bf16.vlgmr.msra.gmra.mrb[32].mxu1 %v1482_v11 }
 0x696   :  { %v1961_v13 = vpop.f32.mrb[44].mxu0 }
 0x697   :  { %v1467_v14 = vadd.f32 %v1961_v13, %v1359_v62  ;;  %v1458_v15 = vpop.f32.mrb[45].mxu0 }
 0x698   :  { %v1459_v16 = vadd.f32 %v1458_v15, %v1359_v62  ;;  %v1962_v17 = vpop.f32.mrb[46].mxu0 }
 0x699   :  { %v1470_v18 = vadd.f32 %v1962_v17, %v1359_v62  ;;  %v1461_v19 = vpop.f32.mrb[47].mxu0  ;;  %v1479_v23 = vmax.f32 %v1467_v14, 0.0 }
 0x69a   :  { %v1462_v20 = vadd.f32 %v1461_v19, %v1359_v62  ;;  %v1477_v25 = vmax.f32 %v1459_v16, 0.0 }
 0x69b   :  { %v1480_v27 = vmax.f32 %v1470_v18, 0.0 }
 0x69c   :  { %v1478_v28 = vmax.f32 %v1462_v20, 0.0 }
 0x69d   :  { %v1484_v26 = vpack.c.bf16 %v1480_v27, %v1479_v23 }
 0x69e   :  { %v1483_v29 = vpack.c.bf16 %v1478_v28, %v1477_v25 }
 0x6a0   :  { %1983 = vmatprep.mubr.bf16.mxu1 %v1483_v29 }
 0x6a1   :  { %1984 = vmatmul.mubr.bf16.gmra.mrb[36].mxu1 %v1484_v26 }
 0x764   :  { %v1981_v31 = vpop.f32.mrb[32].mxu1 }
 0x765   :  { %v1594_v32 = vadd.f32 %v1981_v31, %v1502_v30  ;;  %v1585_v33 = vpop.f32.mrb[33].mxu1 }
 0x766   :  { %v1586_v34 = vadd.f32 %v1585_v33, %v1502_v30  ;;  %v1982_v35 = vpop.f32.mrb[34].mxu1 }
 0x767   :  { %v1618_v36 = vmax.f32 %v1594_v32, 0.0  ;;  %v1597_v37 = vadd.f32 %v1982_v35, %v1502_v30  ;;  %v1588_v38 = vpop.f32.mrb[35].mxu1 }
 0x768   :  { %v1616_v39 = vmax.f32 %v1586_v34, 0.0  ;;  %v1589_v40 = vadd.f32 %v1588_v38, %v1502_v30 }
 0x769   :  { %1627 = vst.msk [vmem:[%s2341_s3 + $0x10] sm:$0xff] %vm1624_vm0, %v1618_v36  ;;  %v1619_v41 = vmax.f32 %v1597_v37, 0.0 }
 0x76a   :  { %1625 = vst.msk [vmem:[%s2341_s3] sm:$0xff] %vm1624_vm0, %v1616_v39  ;;  %v1617_v42 = vmax.f32 %v1589_v40, 0.0 }
 0x76b   :  { %1628 = vst.msk [vmem:[%s2341_s3 + $0x18] sm:$0xff] %vm1624_vm0, %v1619_v41 }
 0x76c   :  { %1626 = vst.msk [vmem:[%s2341_s3 + $0x8] sm:$0xff] %vm1624_vm0, %v1617_v42 }
 0x774   :  { %v1985_v43 = vpop.f32.mrb[36].mxu1 }
 0x775   :  { %v1610_v44 = vadd.f32 %v1985_v43, %v1502_v30  ;;  %v1601_v45 = vpop.f32.mrb[37].mxu1 }
 0x776   :  { %v1602_v46 = vadd.f32 %v1601_v45, %v1502_v30  ;;  %v1986_v47 = vpop.f32.mrb[38].mxu1 }
 0x777   :  { %v1622_v22 = vmax.f32 %v1610_v44, 0.0  ;;  %v1613_v48 = vadd.f32 %v1986_v47, %v1502_v30  ;;  %v1604_v21 = vpop.f32.mrb[39].mxu1 }
 0x778   :  { %v1620_v24 = vmax.f32 %v1602_v46, 0.0  ;;  %v1605_v49 = vadd.f32 %v1604_v21, %v1502_v30 }
 0x779   :  { %1631 = vst.msk [vmem:[%s2341_s3 + $0x30] sm:$0xff] %vm1624_vm0, %v1622_v22  ;;  %v1623_v50 = vmax.f32 %v1613_v48, 0.0 }
 0x77a   :  { %1629 = vst.msk [vmem:[%s2341_s3 + $0x20] sm:$0xff] %vm1624_vm0, %v1620_v24  ;;  %v1621_v51 = vmax.f32 %v1605_v49, 0.0 }
 0x77b   :  { %1632 = vst.msk [vmem:[%s2341_s3 + $0x38] sm:$0xff] %vm1624_vm0, %v1623_v50 }
 0x77c   :  { %1630 = vst.msk [vmem:[%s2341_s3 + $0x28] sm:$0xff] %vm1624_vm0, %v1621_v51 }
 0x77d   :  { %1637 = vsyncpa [#allocation3], 1 }
 0x77e   :  { %1638 = vsyncpa [#allocation5], 1 }

</bundles_post_ra>
